<compile_context>
chip_gen: v7x
topology: tpu7x:2x2x1
jax: 0.10.0
libtpu: 0.0.40
codegen_flags: <defaults>
</compile_context>

<pallas_src>
import math

import jax
import jax.numpy as jnp
from jax import lax
from jax.experimental import pallas as pl
from jax.experimental.pallas import tpu as pltpu


def _round_up(x, m):
    return ((x + m - 1) // m) * m


# ---------------------------------------------------------------------------
# Kernel 1: fused per-(batch, head) QKV projection + scaled-dot-product attn
# ---------------------------------------------------------------------------
def _attention_kernel(scale):
    def kernel(x_ref, wq_ref, wk_ref, wv_ref, bq_ref, bk_ref, bv_ref,
               mask_ref, ctx_ref):
        x = x_ref[0]                                            # (S, E)

        q = jnp.dot(x, wq_ref[0], preferred_element_type=jnp.float32) + bq_ref[0]
        k = jnp.dot(x, wk_ref[0], preferred_element_type=jnp.float32) + bk_ref[0]
        v = jnp.dot(x, wv_ref[0], preferred_element_type=jnp.float32) + bv_ref[0]

        # scores = q @ k^T / sqrt(dh) + mask   (mask broadcasts over query rows)
        s = lax.dot_general(q, k, (((1,), (1,)), ((), ())),
                            preferred_element_type=jnp.float32) * scale
        s = s + mask_ref[0]                                     # (1, S) -> (S, S)

        # numerically stable softmax over keys
        s = s - jnp.max(s, axis=-1, keepdims=True)
        p = jnp.exp(s)
        p = p / jnp.sum(p, axis=-1, keepdims=True)
        # TODO(synk): attention-probs dropout omitted (inference / p=0 path).

        ctx = jnp.dot(p, v, preferred_element_type=jnp.float32)  # (S, dh)
        ctx_ref[0, 0] = ctx.astype(ctx_ref.dtype)

    return kernel


# ---------------------------------------------------------------------------
# Kernel 2: output dense + residual add + LayerNorm (row-tiled)
# ---------------------------------------------------------------------------
def _output_kernel(eps):
    def kernel(ctx_ref, res_ref, wo_ref, bo_ref, g_ref, beta_ref, out_ref):
        ctx = ctx_ref[...]                                      # (TM, Dh)
        h = jnp.dot(ctx, wo_ref[...], preferred_element_type=jnp.float32)
        h = h + bo_ref[...]                                     # (1, E) broadcast
        # TODO(synk): hidden-states dropout omitted (inference / p=0 path).
        h = h + res_ref[...].astype(jnp.float32)                # residual add

        mean = jnp.mean(h, axis=-1, keepdims=True)
        c = h - mean
        var = jnp.mean(c * c, axis=-1, keepdims=True)           # biased, like torch
        h = c * lax.rsqrt(var + eps)
        h = h * g_ref[...] + beta_ref[...]
        out_ref[...] = h.astype(out_ref.dtype)

    return kernel


# ---------------------------------------------------------------------------
# Wrapper
# ---------------------------------------------------------------------------
def bert_attention(hidden_states, attention_mask, params, *, eps=1e-12,
                   tile_m=256):
    """hidden_states: [B, S, E]; attention_mask: additive mask [B, S]."""
    B, S, E = hidden_states.shape
    H, E_w, dh = params["wq"].shape
    assert E_w == E
    Dh = H * dh
    scale = 1.0 / math.sqrt(dh)

    mask3 = attention_mask.reshape(B, 1, S).astype(jnp.float32)

    # --- attention core: grid over (batch, head), both parallel -------------
    ctx = pl.pallas_call(
        _attention_kernel(scale),
        out_shape=jax.ShapeDtypeStruct((B, H, S, dh), jnp.float32),
        grid_spec=pltpu.PrefetchScalarGridSpec(
            num_scalar_prefetch=0,
            grid=(B, H),
            in_specs=[
                pl.BlockSpec((1, S, E), lambda b, h: (b, 0, 0)),    # x
                pl.BlockSpec((1, E, dh), lambda b, h: (h, 0, 0)),   # Wq head slice
                pl.BlockSpec((1, E, dh), lambda b, h: (h, 0, 0)),   # Wk head slice
                pl.BlockSpec((1, E, dh), lambda b, h: (h, 0, 0)),   # Wv head slice
                pl.BlockSpec((1, 1, dh), lambda b, h: (h, 0, 0)),   # bq
                pl.BlockSpec((1, 1, dh), lambda b, h: (h, 0, 0)),   # bk
                pl.BlockSpec((1, 1, dh), lambda b, h: (h, 0, 0)),   # bv
                pl.BlockSpec((1, 1, S), lambda b, h: (b, 0, 0)),    # additive mask
            ],
            out_specs=pl.BlockSpec((1, 1, S, dh), lambda b, h: (b, h, 0, 0)),
        ),
        compiler_params=pltpu.CompilerParams(
            dimension_semantics=("parallel", "parallel")),
    )(hidden_states, params["wq"], params["wk"], params["wv"],
      params["bq"], params["bk"], params["bv"], mask3)

    # (B, H, S, dh) -> (B, S, H*dh) -> (M, Dh)   (layout plumbing in wrapper)
    ctx2d = ctx.transpose(0, 2, 1, 3).reshape(B * S, Dh)
    res2d = hidden_states.reshape(B * S, E)

    # --- row tiling for output projection + LN ------------------------------
    M = B * S
    tm = min(tile_m, _round_up(M, 8))       # big tiles when M is big, 8-aligned
    M_pad = _round_up(M, tm)
    if M_pad != M:
        ctx2d = jnp.pad(ctx2d, ((0, M_pad - M), (0, 0)))
        res2d = jnp.pad(res2d, ((0, M_pad - M), (0, 0)))

    out = pl.pallas_call(
        _output_kernel(eps),
        out_shape=jax.ShapeDtypeStruct((M_pad, E), hidden_states.dtype),
        grid_spec=pltpu.PrefetchScalarGridSpec(
            num_scalar_prefetch=0,
            grid=(M_pad // tm,),
            in_specs=[
                pl.BlockSpec((tm, Dh), lambda i: (i, 0)),   # context rows
                pl.BlockSpec((tm, E), lambda i: (i, 0)),    # residual rows
                pl.BlockSpec((Dh, E), lambda i: (0, 0)),    # Wo (resident)
                pl.BlockSpec((1, E), lambda i: (0, 0)),     # bo
                pl.BlockSpec((1, E), lambda i: (0, 0)),     # LN gamma
                pl.BlockSpec((1, E), lambda i: (0, 0)),     # LN beta
            ],
            out_specs=pl.BlockSpec((tm, E), lambda i: (i, 0)),
        ),
        compiler_params=pltpu.CompilerParams(
            dimension_semantics=("parallel",)),
    )(ctx2d, res2d, params["wo"], params["bo"],
      params["ln_gamma"], params["ln_beta"])

    return out[:M].reshape(B, S, E)


# ---------------------------------------------------------------------------
# Parameters (stored in kernel-friendly layout; equivalent to torch weights)
#   torch query.weight (Dh, E)  <->  wq[h] = query.weight[h*dh:(h+1)*dh, :].T
#   torch output.dense.weight (E, Dh)  <->  wo = output.dense.weight.T
# ---------------------------------------------------------------------------
def init_params(key, emb_dim, num_heads, head_dim, dtype=jnp.float32):
    ks = jax.random.split(key, 10)
    Dh = num_heads * head_dim
    wq = jax.random.normal(ks[0], (num_heads, emb_dim, head_dim), dtype) * 0.02
    wk = jax.random.normal(ks[1], (num_heads, emb_dim, head_dim), dtype) * 0.02
    wv = jax.random.normal(ks[2], (num_heads, emb_dim, head_dim), dtype) * 0.02
    bq = jax.random.normal(ks[3], (num_heads, 1, head_dim), dtype) * 0.02
    bk = jax.random.normal(ks[4], (num_heads, 1, head_dim), dtype) * 0.02
    bv = jax.random.normal(ks[5], (num_heads, 1, head_dim), dtype) * 0.02
    wo = jax.random.normal(ks[6], (Dh, emb_dim), dtype) * 0.02
    bo = jax.random.normal(ks[7], (1, emb_dim), dtype) * 0.02
    ln_gamma = 1.0 + jax.random.normal(ks[8], (1, emb_dim), dtype) * 0.1
    ln_beta = jax.random.normal(ks[9], (1, emb_dim), dtype) * 0.1
    return dict(wq=wq, wk=wk, wv=wv, bq=bq, bk=bk, bv=bv,
                wo=wo, bo=bo, ln_gamma=ln_gamma, ln_beta=ln_beta)


# ---------------------------------------------------------------------------
# Pure-JAX reference (mirrors the torch forward, dropout = identity)
# ---------------------------------------------------------------------------
def reference_attention(x, mask, params, eps=1e-12):
    B, S, E = x.shape
    H, _, dh = params["wq"].shape
    scale = 1.0 / math.sqrt(dh)
    q = jnp.einsum("bse,hed->bhsd", x, params["wq"]) + params["bq"][None]
    k = jnp.einsum("bse,hed->bhsd", x, params["wk"]) + params["bk"][None]
    v = jnp.einsum("bse,hed->bhsd", x, params["wv"]) + params["bv"][None]
    s = jnp.einsum("bhqd,bhkd->bhqk", q, k) * scale
    s = s + mask[:, None, None, :]
    p = jax.nn.softmax(s, axis=-1)
    ctx = jnp.einsum("bhqk,bhkd->bhqd", p, v)
    ctx = ctx.transpose(0, 2, 1, 3).reshape(B, S, H * dh)
    h = ctx @ params["wo"] + params["bo"][0]
    h = h + x
    mean = jnp.mean(h, axis=-1, keepdims=True)
    var = jnp.mean((h - mean) ** 2, axis=-1, keepdims=True)
    h = (h - mean) * lax.rsqrt(var + eps)
    return h * params["ln_gamma"][0] + params["ln_beta"][0]


if __name__ == "__main__":
    batch, seq, emb_dim, num_heads = 2, 8, 32, 4
    head_dim = emb_dim // num_heads

    key = jax.random.PRNGKey(0)
    kx, kp = jax.random.split(key)

    x = jax.random.normal(kx, (batch, seq, emb_dim), jnp.float32)
    params = init_params(kp, emb_dim, num_heads, head_dim)

    # additive attention mask: 0 for valid keys, -10000 for padded keys
    lengths = jnp.array([6, 8])
    pos = jnp.arange(seq)
    attention_mask = jnp.where(pos[None, :] < lengths[:, None],
                               0.0, -10000.0).astype(jnp.float32)

    out = bert_attention(x, attention_mask, params)
    out = jax.block_until_ready(out)

    ref = reference_attention(x, attention_mask, params)
    assert out.shape == (batch, seq, emb_dim)
    assert jnp.allclose(out, ref, atol=1e-4, rtol=1e-4)
    print("KERNEL_OK")
</pallas_src>

<mosaic_0001>
module attributes {stable_mosaic.version = 11 : i64} {
  func.func @kernel(%arg0: i32, %arg1: i32, %arg2: memref<1x8x32xf32, #tpu.memory_space<vmem>>, %arg3: memref<1x32x8xf32, #tpu.memory_space<vmem>>, %arg4: memref<1x32x8xf32, #tpu.memory_space<vmem>>, %arg5: memref<1x32x8xf32, #tpu.memory_space<vmem>>, %arg6: memref<1x1x8xf32, #tpu.memory_space<vmem>>, %arg7: memref<1x1x8xf32, #tpu.memory_space<vmem>>, %arg8: memref<1x1x8xf32, #tpu.memory_space<vmem>>, %arg9: memref<1x1x8xf32, #tpu.memory_space<vmem>>, %arg10: memref<1x1x8x8xf32, #tpu.memory_space<vmem>>) attributes {dimension_semantics = [#tpu.dimension_semantics<parallel>, #tpu.dimension_semantics<parallel>], iteration_bounds = array<i64: 2, 4>, scalar_prefetch = 0 : i64, scratch_operands = 0 : i64, tpu.core_type = #tpu.core_type<tc>, window_params = [{transform_indices = @transform_0, window_bounds = array<i64: 1, 8, 32>}, {transform_indices = @transform_1, window_bounds = array<i64: 1, 32, 8>}, {transform_indices = @transform_2, window_bounds = array<i64: 1, 32, 8>}, {transform_indices = @transform_3, window_bounds = array<i64: 1, 32, 8>}, {transform_indices = @transform_4, window_bounds = array<i64: 1, 1, 8>}, {transform_indices = @transform_5, window_bounds = array<i64: 1, 1, 8>}, {transform_indices = @transform_6, window_bounds = array<i64: 1, 1, 8>}, {transform_indices = @transform_7, window_bounds = array<i64: 1, 1, 8>}, {transform_indices = @transform_8, window_bounds = array<i64: 1, 1, 8, 8>}]} {
    %c0 = arith.constant 0 : index
    %c0_0 = arith.constant 0 : index
    %c0_1 = arith.constant 0 : index
    %0 = vector.load %arg2[%c0, %c0_0, %c0_1] : memref<1x8x32xf32, #tpu.memory_space<vmem>>, vector<1x8x32xf32>
    %1 = vector.shape_cast %0 : vector<1x8x32xf32> to vector<8x32xf32>
    %c0_2 = arith.constant 0 : index
    %c0_3 = arith.constant 0 : index
    %c0_4 = arith.constant 0 : index
    %2 = vector.load %arg3[%c0_2, %c0_3, %c0_4] : memref<1x32x8xf32, #tpu.memory_space<vmem>>, vector<1x32x8xf32>
    %3 = vector.shape_cast %2 : vector<1x32x8xf32> to vector<32x8xf32>
    %cst = arith.constant dense<0.000000e+00> : vector<8x8xf32>
    %4 = tpu.matmul %1, %3, %cst {dimension_numbers = #tpu.dot_dimension_numbers<[1], [0], [0], [1], [0, 0, 1, 1], [], []>} : vector<8x32xf32>, vector<32x8xf32>, vector<8x8xf32> -> vector<8x8xf32>
    %c0_5 = arith.constant 0 : index
    %c0_6 = arith.constant 0 : index
    %c0_7 = arith.constant 0 : index
    %5 = vector.load %arg6[%c0_5, %c0_6, %c0_7] : memref<1x1x8xf32, #tpu.memory_space<vmem>>, vector<1x1x8xf32>
    %6 = vector.shape_cast %5 : vector<1x1x8xf32> to vector<1x8xf32>
    %7 = vector.broadcast %6 : vector<1x8xf32> to vector<8x8xf32>
    %8 = arith.addf %4, %7 : vector<8x8xf32>
    %c0_8 = arith.constant 0 : index
    %c0_9 = arith.constant 0 : index
    %c0_10 = arith.constant 0 : index
    %9 = vector.load %arg4[%c0_8, %c0_9, %c0_10] : memref<1x32x8xf32, #tpu.memory_space<vmem>>, vector<1x32x8xf32>
    %10 = vector.shape_cast %9 : vector<1x32x8xf32> to vector<32x8xf32>
    %cst_11 = arith.constant dense<0.000000e+00> : vector<8x8xf32>
    %11 = tpu.matmul %1, %10, %cst_11 {dimension_numbers = #tpu.dot_dimension_numbers<[1], [0], [0], [1], [0, 0, 1, 1], [], []>} : vector<8x32xf32>, vector<32x8xf32>, vector<8x8xf32> -> vector<8x8xf32>
    %c0_12 = arith.constant 0 : index
    %c0_13 = arith.constant 0 : index
    %c0_14 = arith.constant 0 : index
    %12 = vector.load %arg7[%c0_12, %c0_13, %c0_14] : memref<1x1x8xf32, #tpu.memory_space<vmem>>, vector<1x1x8xf32>
    %13 = vector.shape_cast %12 : vector<1x1x8xf32> to vector<1x8xf32>
    %14 = vector.broadcast %13 : vector<1x8xf32> to vector<8x8xf32>
    %15 = arith.addf %11, %14 : vector<8x8xf32>
    %c0_15 = arith.constant 0 : index
    %c0_16 = arith.constant 0 : index
    %c0_17 = arith.constant 0 : index
    %16 = vector.load %arg5[%c0_15, %c0_16, %c0_17] : memref<1x32x8xf32, #tpu.memory_space<vmem>>, vector<1x32x8xf32>
    %17 = vector.shape_cast %16 : vector<1x32x8xf32> to vector<32x8xf32>
    %cst_18 = arith.constant dense<0.000000e+00> : vector<8x8xf32>
    %18 = tpu.matmul %1, %17, %cst_18 {dimension_numbers = #tpu.dot_dimension_numbers<[1], [0], [0], [1], [0, 0, 1, 1], [], []>} : vector<8x32xf32>, vector<32x8xf32>, vector<8x8xf32> -> vector<8x8xf32>
    %c0_19 = arith.constant 0 : index
    %c0_20 = arith.constant 0 : index
    %c0_21 = arith.constant 0 : index
    %19 = vector.load %arg8[%c0_19, %c0_20, %c0_21] : memref<1x1x8xf32, #tpu.memory_space<vmem>>, vector<1x1x8xf32>
    %20 = vector.shape_cast %19 : vector<1x1x8xf32> to vector<1x8xf32>
    %21 = vector.broadcast %20 : vector<1x8xf32> to vector<8x8xf32>
    %22 = arith.addf %18, %21 : vector<8x8xf32>
    %cst_22 = arith.constant dense<0.000000e+00> : vector<8x8xf32>
    %23 = tpu.matmul %8, %15, %cst_22 {dimension_numbers = #tpu.dot_dimension_numbers<[1], [1], [0], [0], [0, 0, 1, 0], [], []>} : vector<8x8xf32>, vector<8x8xf32>, vector<8x8xf32> -> vector<8x8xf32>
    %cst_23 = arith.constant 0.353553385 : f32
    %24 = vector.broadcast %cst_23 : f32 to vector<8x8xf32>
    %25 = arith.mulf %23, %24 : vector<8x8xf32>
    %c0_24 = arith.constant 0 : index
    %c0_25 = arith.constant 0 : index
    %c0_26 = arith.constant 0 : index
    %26 = vector.load %arg9[%c0_24, %c0_25, %c0_26] : memref<1x1x8xf32, #tpu.memory_space<vmem>>, vector<1x1x8xf32>
    %27 = vector.shape_cast %26 : vector<1x1x8xf32> to vector<1x8xf32>
    %28 = vector.broadcast %27 : vector<1x8xf32> to vector<8x8xf32>
    %29 = arith.addf %25, %28 : vector<8x8xf32>
    %cst_27 = arith.constant dense<0xFF800000> : vector<8xf32>
    %30 = vector.multi_reduction <maximumf>, %29, %cst_27 [1] : vector<8x8xf32> to vector<8xf32>
    %31 = vector.shape_cast %30 : vector<8xf32> to vector<8x1xf32>
    %32 = vector.broadcast %31 : vector<8x1xf32> to vector<8x8xf32>
    %33 = arith.subf %29, %32 : vector<8x8xf32>
    %34 = math.exp %33 : vector<8x8xf32>
    %cst_28 = arith.constant dense<0.000000e+00> : vector<8xf32>
    %35 = vector.multi_reduction <add>, %34, %cst_28 [1] : vector<8x8xf32> to vector<8xf32>
    %36 = vector.shape_cast %35 : vector<8xf32> to vector<8x1xf32>
    %37 = vector.broadcast %36 : vector<8x1xf32> to vector<8x8xf32>
    %38 = arith.divf %34, %37 : vector<8x8xf32>
    %cst_29 = arith.constant dense<0.000000e+00> : vector<8x8xf32>
    %39 = tpu.matmul %38, %22, %cst_29 {dimension_numbers = #tpu.dot_dimension_numbers<[1], [0], [0], [1], [0, 0, 1, 1], [], []>} : vector<8x8xf32>, vector<8x8xf32>, vector<8x8xf32> -> vector<8x8xf32>
    %c0_30 = arith.constant 0 : index
    %c0_31 = arith.constant 0 : index
    %c0_32 = arith.constant 0 : index
    %c0_33 = arith.constant 0 : index
    %40 = vector.load %arg10[%c0_30, %c0_31, %c0_32, %c0_33] : memref<1x1x8x8xf32, #tpu.memory_space<vmem>>, vector<1x1x8x8xf32>
    %41 = vector.shape_cast %40 : vector<1x1x8x8xf32> to vector<8x8xf32>
    %42 = vector.shape_cast %39 : vector<8x8xf32> to vector<1x1x8x8xf32>
    tpu.vector_store %arg10[%c0_30, %c0_31, %c0_32, %c0_33], %42 {strides = array<i32>} : memref<1x1x8x8xf32, #tpu.memory_space<vmem>>, vector<1x1x8x8xf32>,
    return
  }
  func.func @transform_0(%arg0: i32, %arg1: i32) -> (i32, i32, i32) {
    %c0_i32 = arith.constant 0 : i32
    %c0_i32_0 = arith.constant 0 : i32
    %c0_i32_1 = arith.constant 0 : i32
    return %arg0, %c0_i32, %c0_i32_0 : i32, i32, i32
  }
  func.func @transform_1(%arg0: i32, %arg1: i32) -> (i32, i32, i32) {
    %c0_i32 = arith.constant 0 : i32
    %c0_i32_0 = arith.constant 0 : i32
    %c0_i32_1 = arith.constant 0 : i32
    return %arg1, %c0_i32, %c0_i32_0 : i32, i32, i32
  }
  func.func @transform_2(%arg0: i32, %arg1: i32) -> (i32, i32, i32) {
    %c0_i32 = arith.constant 0 : i32
    %c0_i32_0 = arith.constant 0 : i32
    %c0_i32_1 = arith.constant 0 : i32
    return %arg1, %c0_i32, %c0_i32_0 : i32, i32, i32
  }
  func.func @transform_3(%arg0: i32, %arg1: i32) -> (i32, i32, i32) {
    %c0_i32 = arith.constant 0 : i32
    %c0_i32_0 = arith.constant 0 : i32
    %c0_i32_1 = arith.constant 0 : i32
    return %arg1, %c0_i32, %c0_i32_0 : i32, i32, i32
  }
  func.func @transform_4(%arg0: i32, %arg1: i32) -> (i32, i32, i32) {
    %c0_i32 = arith.constant 0 : i32
    %c0_i32_0 = arith.constant 0 : i32
    %c0_i32_1 = arith.constant 0 : i32
    return %arg1, %c0_i32, %c0_i32_0 : i32, i32, i32
  }
  func.func @transform_5(%arg0: i32, %arg1: i32) -> (i32, i32, i32) {
    %c0_i32 = arith.constant 0 : i32
    %c0_i32_0 = arith.constant 0 : i32
    %c0_i32_1 = arith.constant 0 : i32
    return %arg1, %c0_i32, %c0_i32_0 : i32, i32, i32
  }
  func.func @transform_6(%arg0: i32, %arg1: i32) -> (i32, i32, i32) {
    %c0_i32 = arith.constant 0 : i32
    %c0_i32_0 = arith.constant 0 : i32
    %c0_i32_1 = arith.constant 0 : i32
    return %arg1, %c0_i32, %c0_i32_0 : i32, i32, i32
  }
  func.func @transform_7(%arg0: i32, %arg1: i32) -> (i32, i32, i32) {
    %c0_i32 = arith.constant 0 : i32
    %c0_i32_0 = arith.constant 0 : i32
    %c0_i32_1 = arith.constant 0 : i32
    return %arg0, %c0_i32, %c0_i32_0 : i32, i32, i32
  }
  func.func @transform_8(%arg0: i32, %arg1: i32) -> (i32, i32, i32, i32) {
    %c0_i32 = arith.constant 0 : i32
    %c0_i32_0 = arith.constant 0 : i32
    %c0_i32_1 = arith.constant 0 : i32
    return %arg0, %arg1, %c0_i32, %c0_i32_0 : i32, i32, i32, i32
  }
}

</mosaic_0001>

<bundles_post_ra>
// kernel: tpu_custom_call.1
= control target key start
LH: loop header
LB: loop body
LE: loop exit
PB: predicated region body
PF: predicated region fallthrough
CT: control target
= control target key end

     0   :  { %s1537_s0 = inlined_call_operand.vmem [shape: f32[2,8,32], index: 0, kind: input, shape index: {}]   ;;  %s1538_s1 = inlined_call_operand.vmem [shape: f32[4,32,8], index: 1, kind: input, shape index: {}]   ;;  %s1539_s2 = inlined_call_operand.vmem [shape: f32[4,32,8], index: 2, kind: input, shape index: {}]   ;;  %s1540_s3 = inlined_call_operand.vmem [shape: f32[4,32,8], index: 3, kind: input, shape index: {}]   ;;  %s1541_s4 = inlined_call_operand.vmem [shape: f32[4,1,8], index: 4, kind: input, shape index: {}]   ;;  %s1542_s5 = inlined_call_operand.vmem [shape: f32[4,1,8], index: 5, kind: input, shape index: {}]   ;;  %s1543_s6 = inlined_call_operand.vmem [shape: f32[4,1,8], index: 6, kind: input, shape index: {}]   ;;  %s1544_s7 = inlined_call_operand.vmem [shape: f32[2,1,8], index: 7, kind: input, shape index: {}]   ;;  %s1545_s8 = inlined_call_operand.hbm [shape: f32[2,4,8,8], index: 8, kind: output, shape index: {}]  }
   0x1   :  { %1547 = sst [smem:[#allocation6_spill]] %s1537_s0 }
   0x2   :  { %13 = vsyncpa [#allocation3], 0 }
   0x3   :  { %15 = vsyncpa [#allocation3 + $0x1], 0  ;;  %s1344_s27 = smov 0   ;;  %s1346_s28 = smov 0  }
   0x4   :  { %s1348_s29 = smov 0   ;;  %s1350_s30 = smov 0  }
   0x5   :  { %s1352_s9 = smov 0   ;;  %s1354_s10 = smov 0  }
   0x6   :  { %s1356_s11 = smov 0   ;;  %s1358_s12 = smov 0  }
   0x7 LB: > { %s1010_s13 = sadd.s32 4294967295, %s1293_s12   ;;  %s1011_s14 = sadd.s32 4294967294, %s1293_s12   ;;  %s1293_s12 = sphi %s1358_s12, %s21_s12   ;;  %s1289_s11 = sphi %s1356_s11, %s1559_s11   ;;  %s1285_s10 = sphi %s1354_s10, %s1558_s10   ;;  %s1281_s9 = sphi %s1352_s9, %s1557_s9   ;;  %s1277_s30 = sphi %s1350_s30, %s1556_s30   ;;  %s1273_s29 = sphi %s1348_s29, %s1555_s29   ;;  %s1269_s28 = sphi %s1346_s28, %s1554_s28   ;;  %s1265_s27 = sphi %s1344_s27, %s1553_s27  }
   0x8   : > { %s30_s15 = sadd.s32 1, %s1285_s10  ;;  %s33_s16 = sadd.s32 1, %s1289_s11 }
   0x9   : > { %p31_p0 = scmp.ge.s32.totalorder %s30_s15, 4  ;;  %p260_p1 = scmp.ne.s32.totalorder %s1273_s29, %s1269_s28 }
   0xa   : > { %p261_p2 = scmp.eq.s32.totalorder %s1010_s13, 7  ;;  %p266_p5 = scmp.ne.s32.totalorder %s1269_s28, %s1265_s27 }
   0xb   : > { %s1561_s15 = smov (%p31_p0, %s30_s15), 0  ;;  %s1563_s16 = smov (!%p31_p0, %s33_s16), %s1289_s11 }
   0xc   : > { %s246_s17 = ssub.s32 %s1285_s10, %s1561_s15  ;;  %p1395_p3 = por %p261_p2, %p260_p1 }
   0xd   : > { %p35_p4 = scmp.ge.s32.totalorder %s1563_s16, 2  ;;  %p267_p6 = scmp.eq.s32.totalorder %s1011_s14, 7 }
   0xe   : > { %p1014_p7 = scmp.ge.s32.totalorder %s1293_s12, 1  ;;  %p340_p9 = scmp.lt.s32.totalorder %s1293_s12, 9 }
   0xf   : > { %s1565_s16 = smov (%p35_p4, %s1563_s16), 0  ;;  %p1404_p8 = por %p267_p6, %p266_p5 }
  0x10   : > { %1549 = sst [smem:[#allocation5_spill]] %s1565_s16  ;;  %s245_s20 = ssub.s32 %s1289_s11, %s1565_s16 }
  0x11   : > { %s250_s21 = sadd.s32 1, %s1273_s29  ;;  %s247_s22 = sor.u32 %s246_s17, %s245_s20 }
  0x12   : > { %p341_p10 = pnand %p1014_p7, %p340_p9  ;;  %p248_p11 = scmp.eq.s32.totalorder %s247_s22, 0 }
  0x13   : > { %p404_p12 = scmp.lt.s32.totalorder (!%p341_p10), %s1277_s30, 3  ;;  %p400_p13 = scmp.lt.s32.totalorder (!%p341_p10), %s1281_s9, 1  ;;  %v1295_v0 = vmov (!%p341_p10), 0.0|0.0   ;;  %vm1296_vm0 = vmmov (!%p341_p10), 0   ;;  %v1297_v1 = vmov (!%p341_p10), 0.0   ;;  %vm443_vm1 = vcmask (!%p341_p10), 261120  }
  0x14   : > { %s1413_s23 = scalar_select %p248_p11, %s1273_s29, %s250_s21  }
  0x15   : > { %344 = sbr.rel (%p341_p10) target bundleno = 1015 (0x3f7), region = 52  ;;  %1109 = vmatprep.subr.bf16.mxu1 (!%p341_p10), %v1295_v0  ;;  %1103 = vmatprep.subr.bf16.mxu0 (!%p341_p10), %v1295_v0  ;;  %s1551_s0 = sld [smem:[#allocation6_spill]] (!%p341_p10)  ;;  %vm679_vm2 = vcmask (!%p341_p10), 64512  }
  0x16   : > { %1079 = vmatprep.mubr.msk.f32.mxu1 (!%p341_p10), %vm1296_vm0, %v1297_v1  ;;  %1068 = vmatprep.mubr.msk.f32.mxu0 (!%p341_p10), %vm1296_vm0, %v1297_v1 }
  0x1c   : > { %s1420_s24 = scalar_select %p404_p12, %s1277_s30, 3 }
  0x1d   : > { %s1425_s25 = scalar_select %p400_p13, %s1281_s9, 1 }
  0x1e   : > { %s1428_s26 = sshll.u32 %s1420_s24, 5  ;;  %s421_s14 = scalar_lea.vmem %s1541_s4, %s1420_s24 }
  0x1f   : > { %s413_s17 = scalar_lea.vmem %s1539_s2, %s1428_s26  ;;  %s408_s22 = scalar_lea.vmem %s1538_s1, %s1428_s26  ;;  %v1023_v16 = vld [vmem:[%s421_s14] ss:$0 sm:$0xff] }
  0x20   : > { %v517_v2 = vld [vmem:[%s413_s17] sm:$0xff]  ;;  %v518_v3 = vld [vmem:[%s413_s17 + $0x8] sm:$0xff]  ;;  %v519_v4 = vld [vmem:[%s413_s17 + $0x10] sm:$0xff]  ;;  %s1016_s16 = sshll.u32 %s1425_s25, 3  ;;  %s418_s21 = scalar_lea.vmem %s1540_s3, %s1428_s26 }
  0x21   : > { %v1110_v5 = vpack.c.bf16 %v518_v3, %v517_v2  ;;  %v432_v6 = vld [vmem:[%s408_s22] sm:$0xff]  ;;  %v433_v7 = vld [vmem:[%s408_s22 + $0x8] sm:$0xff]  ;;  %v520_v8 = vld [vmem:[%s413_s17 + $0x18] sm:$0xff]  ;;  %s403_s20 = scalar_lea.vmem %s1551_s0, %s1016_s16  ;;  %s424_s16 = scalar_lea.vmem %s1542_s5, %s1420_s24 }
  0x22   : > { %v1104_v9 = vpack.c.bf16 %v433_v7, %v432_v6  ;;  %v434_v10 = vld [vmem:[%s408_s22 + $0x10] sm:$0xff]  ;;  %v435_v11 = vld [vmem:[%s408_s22 + $0x18] sm:$0xff]  ;;  %v1113_v12 = vpack.c.bf16 %v520_v8, %v519_v4  ;;  %v431_v14 = vld [vmem:[%s403_s20] sm:$0xff]  ;;  %s430_s13 = scalar_lea.vmem %s1544_s7, %s1425_s25  ;;  %s427_s14 = scalar_lea.vmem %s1543_s6, %s1420_s24 }
  0x23   : > { %1111 = vmatpush3.bf16.msra.mxu1 %v1110_v5  ;;  %v1107_v13 = vpack.c.bf16 %v435_v11, %v434_v10  ;;  %v1025_v15 = vld [vmem:[%s424_s16] ss:$0 sm:$0xff]  ;;  %v599_v24 = vld [vmem:[%s418_s21 + $0x8] sm:$0xff]  ;;  %v600_v25 = vld [vmem:[%s418_s21 + $0x10] sm:$0xff]  ;;  %s397_s20 = sand.u32 1, %s1269_s28  }
  0x24   : > { %1105 = vmatpush3.bf16.msra.mxu0 %v1104_v9  ;;  %1112 = vmatprep.subr.bf16.mxu1 %v1295_v0  ;;  %v598_v23 = vld [vmem:[%s418_s21] sm:$0xff]  ;;  %v601_v27 = vld [vmem:[%s418_s21 + $0x18] sm:$0xff]  ;;  %s1015_s17 = sshll.u32 %s397_s20, 3  ;;  %s1034_s21 = sshll.u32 %s1281_s9, 2 }
  0x25   : > { %1106 = vmatprep.subr.bf16.mxu0 %v1295_v0  ;;  %v1116_v26 = vpack.c.bf16 %v599_v24, %v598_v23  ;;  %v1119_v28 = vpack.c.bf16 %v601_v27, %v600_v25  ;;  %v1031_v30 = vld [vmem:[%s430_s13] ss:$0 sm:$0xff]  ;;  %s862_s16 = sadd.s32 %s1277_s30, %s1034_s21  ;;  %s399_s13 = scalar_lea.vmem [#allocation2], %s1015_s17 }
  0x26   : > { %v1027_v41 = vld [vmem:[%s427_s14] ss:$0 sm:$0xff]  ;;  %s1035_s22 = sshll.u32 %s862_s16, 7  ;;  %s866_s25 = sshll.u32 %s399_s13, 4  ;;  %s1485_s25 = int_to_ptr.vmem [resolvable:$true] %s866_s25 }
  0x27   : > { %1114 = vmatpush3.bf16.msra.mxu1 %v1113_v12  ;;  %s1483_s14 = scalar_lea.hbm %s1545_s8, %s1035_s22  ;;  %s851_s0 = scalar_lea.sflag [#allocation3], %s397_s20 }
  0x28   : > { %1108 = vmatpush3.bf16.msra.mxu0 %v1107_v13  ;;  %1093 = vmatprep.subr.mxu1 %v1297_v1  ;;  %s1199_s9 = scalar_lea.vmem %s1485_s25, 128  ;;  %s1298_s30 = smov [#allocation2]  }
  0x29   : > { %1115 = vmatprep.subr.bf16.mxu0 %v1295_v0  ;;  %p1200_p0 = scmp.ne.s32.totalorder %s1485_s25, %s1199_s9  ;;  %s1203_s17 = sshll.u32 %s1298_s30, 4  ;;  %s1204_s17 = int_to_ptr.vmem [resolvable:$false] %s1203_s17 }
  0x2a   : > { %1080 = vmatmul.mubr.msk.f32.vlgmr.msra.gmra.mrb[0].mxu1 %vm443_vm1, %v431_v14  ;;  %s1205_s21 = scalar_lea.vmem %s1204_s17, 256  ;;  %p1206_p4 = scmp.lt.s32.totalorder %s1485_s25, %s1204_s17 }
  0x2b   : > { %1069 = vmatmul.mubr.msk.f32.vlgmr.msra.gmra.mrb[0].mxu0 %vm443_vm1, %v431_v14  ;;  %1095 = vmatprep.mubr.msk.f32.mxu1 %vm1296_vm0, %v1297_v1  ;;  %p1201_p1 = pnand %p1200_p0, %p1395_p3  ;;  %p1207_p5 = scmp.lt.s32.totalorder %s1205_s21, %s1199_s9 }
  0x2c   : > { %1090 = vmatprep.mubr.msk.f32.mxu0 %vm1296_vm0, %v1297_v1  ;;  %1117 = vmatpush3.bf16.msra.mxu0 %v1116_v26 }
  0x2d   : > { %1118 = vmatprep.subr.bf16.mxu0 %v1295_v0  ;;  %p1202_p2 = pneg %p1201_p1  ;;  %p1208_p6 = por %p1207_p5, %p1206_p4 }
  0x2f   : > { %p1209_p7 = pnand %p1208_p6, %p1202_p2 }
  0x30   : > { %1120 = vmatpush3.bf16.msra.mxu0 %v1119_v28 }
  0x33   : > { %1091 = vmatmul.mubr.msk.f32.vlgmr.msra.gmra.mrb[2].mxu0 %vm443_vm1, %v431_v14 }
  0xfd   : > { %v594_v17 = vpop.f32.mrb[0].mxu1 }
  0xfe   : > { %v595_v18 = vadd.f32 %v1025_v15, %v594_v17  ;;  %v1081_v19 = vpop.f32.mrb[1].mxu1  ;;  %v513_v20 = vpop.f32.mrb[0].mxu0 }
  0xff   : > { %v514_v21 = vadd.f32 %v1023_v16, %v513_v20  ;;  %v1070_v22 = vpop.f32.mrb[1].mxu0 }
 0x100   : > { %1094 = vmatpush3.xpose.msk.msra.mxu1 %vm679_vm2, %v595_v18 }
 0x101   : > { %1098 = vmatprep.subr.mxu1 %v1297_v1 }
 0x103   : > { %1096 = vmatmul.mubr.msk.f32.vlgmr.msra.gmra.mrb[2].mxu1 %vm679_vm2, %v514_v21 }
 0x104   : > { %1100 = vmatprep.mubr.msk.f32.mxu1 %vm1296_vm0, %v1297_v1 }
 0x106   : > { %v675_v40 = vpop.f32.mrb[2].mxu0 }
 0x107   : > { %v1092_v42 = vpop.f32.mrb[3].mxu0  ;;  %v676_v43 = vadd.f32 %v1027_v41, %v675_v40 }
 0x109   : > { %1099 = vmatpush3.msra.mxu1 %v676_v43 }
 0x1d6   : > { %v752_v29 = vpop.f32.mrb[2].mxu1 }
 0x1d7   : > { %v756_v31 = vmul.f32 0.35355338, %v752_v29  ;;  %v1097_v32 = vpop.f32.mrb[3].mxu1 }
 0x1d9   : > { %v764_v33 = vadd.f32 %v1031_v30, %v756_v31 }
 0x1db   : > { %v765_v34 = vsel %vm679_vm2, %v764_v33, -inf }
 0x1dc   : > { %766 = vmax.xlane.f32.xlu0 %v765_v34 }
 0x269   : > { %v767_v35 = vpop.xlane.xlu0 %766 }
 0x26a   : > { %v768_v36 = vsub.f32 %v764_v33, %v767_v35 }
 0x26c   : > { %v769_v37 = vmul.f32 1.442695, %v768_v36 }
 0x26e   : > { %1195 = vpow2.f32 %v769_v37 }
 0x278   : > { %v1196_v38 = vpop.eup %1195 }
 0x279   : > { %v771_v39 = vsel %vm679_vm2, %v1196_v38, 0.0 }
 0x27a   : > { %772 = vadd.xlane.f32.xlu0 %v771_v39 }
 0x307   : > { %v773_v44 = vpop.xlane.xlu0 %772 }
 0x308   : > { %1197 = vrcp.f32 %v773_v44 }
 0x312   : > { %v1198_v45 = vpop.eup %1197 }
 0x313   : > { %v775_v46 = vmul.f32 %v1198_v45, %v1196_v38 }
 0x315   : > { %1101 = vmatmul.mubr.msk.f32.vlgmr.msra.gmra.mrb[4].mxu1 %vm679_vm2, %v775_v46 }
 0x3e8   : > { %v845_v47 = vpop.f32.mrb[4].mxu1 }
 0x3e9   : > { %849 = vst.msk [vmem:[%s399_s13] sm:$0xff] %vm679_vm2, %v845_v47  ;;  %v1102_v48 = vpop.f32.mrb[5].mxu1 }
 0x3ea   : > { %1212 = shalt.err (!%p1209_p7)
}
 0x3eb   : > { %s1213_s20 = scalar_lea.hbm %s1483_s14, 128  ;;  %s1217_s13 = scalar_lea.hbm %s1545_s8, 1024 }
 0x3ec   : > { %p1214_p9 = scmp.ne.s32.totalorder %s1483_s14, %s1213_s20  ;;  %p1218_p12 = scmp.lt.u32.totalorder %s1483_s14, %s1545_s8 }
 0x3ed   : > { %p1219_p13 = scmp.lt.u32.totalorder %s1217_s13, %s1213_s20  ;;  %p1221_p1 = scmp.lt.u32.totalorder %s1213_s20, %s1483_s14 }
 0x3ee   : > { %p1215_p10 = pnand %p1214_p9, %p1395_p3 }
 0x3ef   : > { %p1220_p0 = por %p1219_p13, %p1218_p12 }
 0x3f0   : > { %p1216_p11 = pneg %p1215_p10 }
 0x3f1   : > { %p1222_p2 = por %p1221_p1, %p1220_p0 }
 0x3f3   : > { %p1223_p4 = pnand %p1222_p2, %p1216_p11 }
 0x3f5   : > { %1226 = shalt.err (!%p1223_p4)
}
 0x3f6   : > { %1121 = dma.vmem_to_hbm [thread:$0]  (%p1395_p3), %s1485_s25, 128, %s1483_s14, %s851_s0  }
 0x3f7 PF: > { %p1127_p5 = scmp.ge.s32.totalorder %s1293_s12, 2  ;;  %s878_s9 = sand.u32 1, %s1265_s27  }
 0x3f8   : > { %s879_s30 = scalar_lea.sflag [#allocation3], %s878_s9 }
 0x3f9   : > { %p1124_p6 = pnand %p1127_p5, %p1404_p8 }
 0x3fb   : > { %1260 = dma.done.wait (!%p1124_p6), %s879_s30, 128  }
 0x3fc   : > { %1262 = vsyncadd (!%p1124_p6), %s879_s30, 4294967168  ;;  %s21_s12 = sadd.s32 1, %s1293_s12   ;;  %s1552_s0 = sld [smem:[#allocation5_spill]] }
 0x3fd   : > { %p18_p7 = scmp.ge.s32.totalorder %s21_s12, 10   ;;  %s1553_s27 = smov %s1269_s28 }
 0x3fe   : > { %s1554_s28 = smov %s1273_s29  ;;  %s1555_s29 = smov %s1413_s23 }
 0x3ff   : > { %s1556_s30 = smov %s1285_s10  ;;  %s1557_s9 = smov %s1289_s11 }
 0x400   : > { %s1558_s10 = smov %s1561_s15  ;;  %20 = sbr.rel (!%p18_p7) target bundleno = 7 (0x7), region = 108 }
 0x402   : > { %s1559_s11 = smov %s1552_s0 }
 0x407   :  { %884 = vsyncpa [#allocation3], 1 }
 0x408   :  { %886 = vsyncpa [#allocation3 + $0x1], 1 }

</bundles_post_ra>
